<compile_context>
chip_gen: v6e
topology: v6e:2x2x1
jax: 0.10.0
libtpu: 0.0.40
codegen_flags: <defaults>
</compile_context>

<pallas_src>
import functools
import math

import jax
import jax.numpy as jnp
from jax import lax
from jax.experimental import pallas as pl
from jax.experimental.pallas import tpu as pltpu


def _mha_kernel(q_ref, k_ref, v_ref, wq_ref, wk_ref, wv_ref, wo_ref, o_ref,
                *, n_heads, d_k, d_v, matmul_dtype):
    """One batch element per grid step; all heads fused in-kernel."""
    q = q_ref[0].astype(matmul_dtype)        # (Sq, Dm)
    k = k_ref[0].astype(matmul_dtype)        # (Sk, Dm)
    v = v_ref[0].astype(matmul_dtype)        # (Sk, Dm)
    wq = wq_ref[...].astype(matmul_dtype)    # (Dm, H*Dk)
    wk = wk_ref[...].astype(matmul_dtype)    # (Dm, H*Dk)
    wv = wv_ref[...].astype(matmul_dtype)    # (Dm, H*Dv)
    wo = wo_ref[...].astype(matmul_dtype)    # (H*Dv, Dm_pad)

    # Fused all-head projections: one wide MXU contraction each instead of
    # n_heads tiny (Dm, d_k) matmuls.
    qp = jnp.dot(q, wq, preferred_element_type=jnp.float32)   # (Sq, H*Dk)
    kp = jnp.dot(k, wk, preferred_element_type=jnp.float32)   # (Sk, H*Dk)
    vp = jnp.dot(v, wv, preferred_element_type=jnp.float32)   # (Sk, H*Dv)

    # Fold 1/sqrt(d_k) into Q once (cheaper than scaling the (Sq, Sk) scores).
    qp = qp * (1.0 / math.sqrt(d_k))

    sq = qp.shape[0]
    dm_pad = o_ref.shape[-1]
    acc = jnp.zeros((sq, dm_pad), jnp.float32)

    # Static unrolled head loop (n_heads is small and known at trace time).
    for h in range(n_heads):
        qh = qp[:, h * d_k:(h + 1) * d_k]        # (Sq, Dk), f32
        kh = kp[:, h * d_k:(h + 1) * d_k]        # (Sk, Dk), f32
        vh = vp[:, h * d_v:(h + 1) * d_v]        # (Sk, Dv), f32

        # Contract the last dims directly -- no kh.T relayout through the XLU.
        scores = lax.dot_general(
            qh.astype(matmul_dtype), kh.astype(matmul_dtype),
            dimension_numbers=(((1,), (1,)), ((), ())),
            preferred_element_type=jnp.float32)   # (Sq, Sk)

        # Numerically stable softmax, kept in f32 on the VPU/EUP path (v5e has no
        # bf16 VPU/EUP); the divide goes to the EUP as an approx reciprocal.
        m = jnp.max(scores, axis=-1, keepdims=True)
        p = jnp.exp(scores - m)
        denom = jnp.sum(p, axis=-1, keepdims=True)
        probs = p * pl.reciprocal(denom, approx=True)

        out_h = jnp.dot(probs.astype(matmul_dtype), vh.astype(matmul_dtype),
                        preferred_element_type=jnp.float32)    # (Sq, Dv)

        # Per-head slice of w_o^T; summing contributions over heads == concat + w_o.
        woh = wo[h * d_v:(h + 1) * d_v, :]                      # (Dv, Dm_pad)
        acc = acc + jnp.dot(out_h.astype(matmul_dtype), woh,
                            preferred_element_type=jnp.float32)

    # Single lane-dense store (last dim padded to a multiple of 128).
    o_ref[0] = acc.astype(o_ref.dtype)


def multi_head_attention(q, k, v, w_q, w_k, w_v, w_o, *, n_heads, d_k, d_v,
                         matmul_dtype=jnp.float32):
    """q,k,v: (B, S, d_model).  w_*: PyTorch nn.Linear weights (out, in)."""
    B, Sq, Dm = q.shape
    _, Sk, _ = k.shape

    # nn.Linear weights are (out_features, in_features); transpose so the kernel
    # contracts x @ W directly.  All heads stay in one slab per projection.
    wq_r = w_q.T                     # (Dm, H*Dk)
    wk_r = w_k.T                     # (Dm, H*Dk)
    wv_r = w_v.T                     # (Dm, H*Dv)
    wo_r = w_o.T                     # (H*Dv, Dm)

    # Pad the output feature dim to a lane-dense multiple of 128 so the kernel's
    # output store is an unmasked full-lane vst; padded columns are zero.
    LANES = 128
    Dm_pad = ((Dm + LANES - 1) // LANES) * LANES
    if Dm_pad != Dm:
        wo_r = jnp.pad(wo_r, ((0, 0), (0, Dm_pad - Dm)))

    kernel = functools.partial(_mha_kernel, n_heads=n_heads, d_k=d_k, d_v=d_v,
                               matmul_dtype=matmul_dtype)

    out_padded = pl.pallas_call(
        kernel,
        out_shape=jax.ShapeDtypeStruct((B, Sq, Dm_pad), q.dtype),
        grid_spec=pltpu.PrefetchScalarGridSpec(
            num_scalar_prefetch=0,
            grid=(B,),
            in_specs=[
                pl.BlockSpec((1, Sq, Dm), lambda b: (b, 0, 0)),
                pl.BlockSpec((1, Sk, Dm), lambda b: (b, 0, 0)),
                pl.BlockSpec((1, Sk, Dm), lambda b: (b, 0, 0)),
                pl.BlockSpec((Dm, n_heads * d_k), lambda b: (0, 0)),
                pl.BlockSpec((Dm, n_heads * d_k), lambda b: (0, 0)),
                pl.BlockSpec((Dm, n_heads * d_v), lambda b: (0, 0)),
                pl.BlockSpec((n_heads * d_v, Dm_pad), lambda b: (0, 0)),
            ],
            out_specs=pl.BlockSpec((1, Sq, Dm_pad), lambda b: (b, 0, 0)),
        ),
        compiler_params=pltpu.CompilerParams(
            dimension_semantics=("parallel",)),
    )(q, k, v, wq_r, wk_r, wv_r, wo_r)

    return out_padded[:, :, :Dm] if Dm_pad != Dm else out_padded


def reference_mha(q, k, v, w_q, w_k, w_v, w_o, *, n_heads, d_k, d_v):
    """Pure-JAX replica of the PyTorch forward (mask=None)."""
    B, Sq, Dm = q.shape
    _, Sk, _ = k.shape
    qh = (q @ w_q.T).reshape(B, Sq, n_heads, d_k).transpose(0, 2, 1, 3)
    kh = (k @ w_k.T).reshape(B, Sk, n_heads, d_k).transpose(0, 2, 1, 3)
    vh = (v @ w_v.T).reshape(B, Sk, n_heads, d_v).transpose(0, 2, 1, 3)
    scores = jnp.einsum("bhqd,bhkd->bhqk", qh, kh) / math.sqrt(d_k)
    probs = jax.nn.softmax(scores, axis=-1)
    out = jnp.einsum("bhqk,bhkd->bhqd", probs, vh)
    out = out.transpose(0, 2, 1, 3).reshape(B, Sq, n_heads * d_v)
    return out @ w_o.T


if __name__ == "__main__":
    n_heads, d_model, d_k, d_v = 4, 32, 8, 8
    B, Sq, Sk = 2, 8, 8

    key = jax.random.PRNGKey(0)
    kq, kk, kv, kwq, kwk, kwv, kwo = jax.random.split(key, 7)

    q = jax.random.normal(kq, (B, Sq, d_model), jnp.float32)
    k = jax.random.normal(kk, (B, Sk, d_model), jnp.float32)
    v = jax.random.normal(kv, (B, Sk, d_model), jnp.float32)

    # Deterministic synthetic weights, PyTorch nn.Linear shape: (out, in).
    w_q = jax.random.normal(kwq, (n_heads * d_k, d_model), jnp.float32) * 0.1
    w_k = jax.random.normal(kwk, (n_heads * d_k, d_model), jnp.float32) * 0.1
    w_v = jax.random.normal(kwv, (n_heads * d_v, d_model), jnp.float32) * 0.1
    w_o = jax.random.normal(kwo, (d_model, n_heads * d_v), jnp.float32) * 0.1

    ref = reference_mha(q, k, v, w_q, w_k, w_v, w_o,
                        n_heads=n_heads, d_k=d_k, d_v=d_v)

    # Exact-ish path: f32 MXU operands (approx reciprocal in the softmax only).
    out_f32 = jax.block_until_ready(
        multi_head_attention(q, k, v, w_q, w_k, w_v, w_o,
                             n_heads=n_heads, d_k=d_k, d_v=d_v,
                             matmul_dtype=jnp.float32))
    assert out_f32.shape == (B, Sq, d_model)
    assert jnp.allclose(out_f32, ref, atol=2e-3, rtol=2e-3), "f32 path mismatch"

    # Fast path for v6e/v7x: bf16 MXU operands, f32 accumulation + f32 softmax.
    out_bf16 = jax.block_until_ready(
        multi_head_attention(q, k, v, w_q, w_k, w_v, w_o,
                             n_heads=n_heads, d_k=d_k, d_v=d_v,
                             matmul_dtype=jnp.bfloat16))
    assert out_bf16.shape == (B, Sq, d_model)
    assert jnp.allclose(out_bf16, ref, atol=1e-1, rtol=1e-1), "bf16 path mismatch"

    print("KERNEL_OK")
</pallas_src>

<mosaic_0001>
module attributes {stable_mosaic.version = 11 : i64} {
  func.func @_mha_kernel(%arg0: i32, %arg1: memref<1x8x32xf32, #tpu.memory_space<vmem>>, %arg2: memref<1x8x32xf32, #tpu.memory_space<vmem>>, %arg3: memref<1x8x32xf32, #tpu.memory_space<vmem>>, %arg4: memref<32x32xf32, #tpu.memory_space<vmem>>, %arg5: memref<32x32xf32, #tpu.memory_space<vmem>>, %arg6: memref<32x32xf32, #tpu.memory_space<vmem>>, %arg7: memref<32x128xf32, #tpu.memory_space<vmem>>, %arg8: memref<1x8x128xf32, #tpu.memory_space<vmem>>) attributes {dimension_semantics = [#tpu.dimension_semantics<parallel>], iteration_bounds = array<i64: 2>, scalar_prefetch = 0 : i64, scratch_operands = 0 : i64, tpu.core_type = #tpu.core_type<tc>, window_params = [{transform_indices = @transform_0, window_bounds = array<i64: 1, 8, 32>}, {transform_indices = @transform_1, window_bounds = array<i64: 1, 8, 32>}, {transform_indices = @transform_2, window_bounds = array<i64: 1, 8, 32>}, {pipeline_mode = #tpu.pipeline_mode<synchronous>, transform_indices = @transform_3, window_bounds = array<i64: 32, 32>}, {pipeline_mode = #tpu.pipeline_mode<synchronous>, transform_indices = @transform_4, window_bounds = array<i64: 32, 32>}, {pipeline_mode = #tpu.pipeline_mode<synchronous>, transform_indices = @transform_5, window_bounds = array<i64: 32, 32>}, {pipeline_mode = #tpu.pipeline_mode<synchronous>, transform_indices = @transform_6, window_bounds = array<i64: 32, 128>}, {transform_indices = @transform_7, window_bounds = array<i64: 1, 8, 128>}]} {
    %c0 = arith.constant 0 : index
    %c0_0 = arith.constant 0 : index
    %c0_1 = arith.constant 0 : index
    %0 = vector.load %arg1[%c0, %c0_0, %c0_1] : memref<1x8x32xf32, #tpu.memory_space<vmem>>, vector<1x8x32xf32>
    %1 = vector.shape_cast %0 : vector<1x8x32xf32> to vector<8x32xf32>
    %c0_2 = arith.constant 0 : index
    %c0_3 = arith.constant 0 : index
    %c0_4 = arith.constant 0 : index
    %2 = vector.load %arg2[%c0_2, %c0_3, %c0_4] : memref<1x8x32xf32, #tpu.memory_space<vmem>>, vector<1x8x32xf32>
    %3 = vector.shape_cast %2 : vector<1x8x32xf32> to vector<8x32xf32>
    %c0_5 = arith.constant 0 : index
    %c0_6 = arith.constant 0 : index
    %c0_7 = arith.constant 0 : index
    %4 = vector.load %arg3[%c0_5, %c0_6, %c0_7] : memref<1x8x32xf32, #tpu.memory_space<vmem>>, vector<1x8x32xf32>
    %5 = vector.shape_cast %4 : vector<1x8x32xf32> to vector<8x32xf32>
    %c0_8 = arith.constant 0 : index
    %c0_9 = arith.constant 0 : index
    %6 = vector.load %arg4[%c0_8, %c0_9] : memref<32x32xf32, #tpu.memory_space<vmem>>, vector<32x32xf32>
    %c0_10 = arith.constant 0 : index
    %c0_11 = arith.constant 0 : index
    %7 = vector.load %arg5[%c0_10, %c0_11] : memref<32x32xf32, #tpu.memory_space<vmem>>, vector<32x32xf32>
    %c0_12 = arith.constant 0 : index
    %c0_13 = arith.constant 0 : index
    %8 = vector.load %arg6[%c0_12, %c0_13] : memref<32x32xf32, #tpu.memory_space<vmem>>, vector<32x32xf32>
    %c0_14 = arith.constant 0 : index
    %c0_15 = arith.constant 0 : index
    %9 = vector.load %arg7[%c0_14, %c0_15] : memref<32x128xf32, #tpu.memory_space<vmem>>, vector<32x128xf32>
    %cst = arith.constant dense<0.000000e+00> : vector<8x32xf32>
    %10 = tpu.matmul %1, %6, %cst {dimension_numbers = #tpu.dot_dimension_numbers<[1], [0], [0], [1], [0, 0, 1, 1], [], []>} : vector<8x32xf32>, vector<32x32xf32>, vector<8x32xf32> -> vector<8x32xf32>
    %cst_16 = arith.constant dense<0.000000e+00> : vector<8x32xf32>
    %11 = tpu.matmul %3, %7, %cst_16 {dimension_numbers = #tpu.dot_dimension_numbers<[1], [0], [0], [1], [0, 0, 1, 1], [], []>} : vector<8x32xf32>, vector<32x32xf32>, vector<8x32xf32> -> vector<8x32xf32>
    %cst_17 = arith.constant dense<0.000000e+00> : vector<8x32xf32>
    %12 = tpu.matmul %5, %8, %cst_17 {dimension_numbers = #tpu.dot_dimension_numbers<[1], [0], [0], [1], [0, 0, 1, 1], [], []>} : vector<8x32xf32>, vector<32x32xf32>, vector<8x32xf32> -> vector<8x32xf32>
    %cst_18 = arith.constant 0.353553385 : f32
    %13 = vector.broadcast %cst_18 : f32 to vector<8x32xf32>
    %14 = arith.mulf %10, %13 : vector<8x32xf32>
    %cst_19 = arith.constant 0.000000e+00 : f32
    %15 = vector.broadcast %cst_19 : f32 to vector<8x128xf32>
    %16 = vector.extract_strided_slice %14 {offsets = [0, 0], sizes = [8, 8], strides = [1, 1]} : vector<8x32xf32> to vector<8x8xf32>
    %17 = vector.extract_strided_slice %11 {offsets = [0, 0], sizes = [8, 8], strides = [1, 1]} : vector<8x32xf32> to vector<8x8xf32>
    %18 = vector.extract_strided_slice %12 {offsets = [0, 0], sizes = [8, 8], strides = [1, 1]} : vector<8x32xf32> to vector<8x8xf32>
    %cst_20 = arith.constant dense<0.000000e+00> : vector<8x8xf32>
    %19 = tpu.matmul %16, %17, %cst_20 {dimension_numbers = #tpu.dot_dimension_numbers<[1], [1], [0], [0], [0, 0, 1, 0], [], []>} : vector<8x8xf32>, vector<8x8xf32>, vector<8x8xf32> -> vector<8x8xf32>
    %cst_21 = arith.constant dense<0xFF800000> : vector<8xf32>
    %20 = vector.multi_reduction <maximumf>, %19, %cst_21 [1] : vector<8x8xf32> to vector<8xf32>
    %21 = vector.shape_cast %20 : vector<8xf32> to vector<8x1xf32>
    %22 = vector.broadcast %21 : vector<8x1xf32> to vector<8x8xf32>
    %23 = arith.subf %19, %22 : vector<8x8xf32>
    %24 = math.exp %23 : vector<8x8xf32>
    %cst_22 = arith.constant dense<0.000000e+00> : vector<8xf32>
    %25 = vector.multi_reduction <add>, %24, %cst_22 [1] : vector<8x8xf32> to vector<8xf32>
    %26 = vector.shape_cast %25 : vector<8xf32> to vector<8x1xf32>
    %27 = tpu.reciprocal %26 {approx = true} : vector<8x1xf32> -> vector<8x1xf32>
    %28 = vector.broadcast %27 : vector<8x1xf32> to vector<8x8xf32>
    %29 = arith.mulf %24, %28 : vector<8x8xf32>
    %cst_23 = arith.constant dense<0.000000e+00> : vector<8x8xf32>
    %30 = tpu.matmul %29, %18, %cst_23 {dimension_numbers = #tpu.dot_dimension_numbers<[1], [0], [0], [1], [0, 0, 1, 1], [], []>} : vector<8x8xf32>, vector<8x8xf32>, vector<8x8xf32> -> vector<8x8xf32>
    %31 = vector.extract_strided_slice %9 {offsets = [0, 0], sizes = [8, 128], strides = [1, 1]} : vector<32x128xf32> to vector<8x128xf32>
    %cst_24 = arith.constant dense<0.000000e+00> : vector<8x128xf32>
    %32 = tpu.matmul %30, %31, %cst_24 {dimension_numbers = #tpu.dot_dimension_numbers<[1], [0], [0], [1], [0, 0, 1, 1], [], []>} : vector<8x8xf32>, vector<8x128xf32>, vector<8x128xf32> -> vector<8x128xf32>
    %33 = arith.addf %15, %32 : vector<8x128xf32>
    %34 = vector.extract_strided_slice %14 {offsets = [0, 8], sizes = [8, 8], strides = [1, 1]} : vector<8x32xf32> to vector<8x8xf32>
    %35 = vector.extract_strided_slice %11 {offsets = [0, 8], sizes = [8, 8], strides = [1, 1]} : vector<8x32xf32> to vector<8x8xf32>
    %36 = vector.extract_strided_slice %12 {offsets = [0, 8], sizes = [8, 8], strides = [1, 1]} : vector<8x32xf32> to vector<8x8xf32>
    %cst_25 = arith.constant dense<0.000000e+00> : vector<8x8xf32>
    %37 = tpu.matmul %34, %35, %cst_25 {dimension_numbers = #tpu.dot_dimension_numbers<[1], [1], [0], [0], [0, 0, 1, 0], [], []>} : vector<8x8xf32>, vector<8x8xf32>, vector<8x8xf32> -> vector<8x8xf32>
    %cst_26 = arith.constant dense<0xFF800000> : vector<8xf32>
    %38 = vector.multi_reduction <maximumf>, %37, %cst_26 [1] : vector<8x8xf32> to vector<8xf32>
    %39 = vector.shape_cast %38 : vector<8xf32> to vector<8x1xf32>
    %40 = vector.broadcast %39 : vector<8x1xf32> to vector<8x8xf32>
    %41 = arith.subf %37, %40 : vector<8x8xf32>
    %42 = math.exp %41 : vector<8x8xf32>
    %cst_27 = arith.constant dense<0.000000e+00> : vector<8xf32>
    %43 = vector.multi_reduction <add>, %42, %cst_27 [1] : vector<8x8xf32> to vector<8xf32>
    %44 = vector.shape_cast %43 : vector<8xf32> to vector<8x1xf32>
    %45 = tpu.reciprocal %44 {approx = true} : vector<8x1xf32> -> vector<8x1xf32>
    %46 = vector.broadcast %45 : vector<8x1xf32> to vector<8x8xf32>
    %47 = arith.mulf %42, %46 : vector<8x8xf32>
    %cst_28 = arith.constant dense<0.000000e+00> : vector<8x8xf32>
    %48 = tpu.matmul %47, %36, %cst_28 {dimension_numbers = #tpu.dot_dimension_numbers<[1], [0], [0], [1], [0, 0, 1, 1], [], []>} : vector<8x8xf32>, vector<8x8xf32>, vector<8x8xf32> -> vector<8x8xf32>
    %49 = vector.extract_strided_slice %9 {offsets = [8, 0], sizes = [8, 128], strides = [1, 1]} : vector<32x128xf32> to vector<8x128xf32>
    %cst_29 = arith.constant dense<0.000000e+00> : vector<8x128xf32>
    %50 = tpu.matmul %48, %49, %cst_29 {dimension_numbers = #tpu.dot_dimension_numbers<[1], [0], [0], [1], [0, 0, 1, 1], [], []>} : vector<8x8xf32>, vector<8x128xf32>, vector<8x128xf32> -> vector<8x128xf32>
    %51 = arith.addf %33, %50 : vector<8x128xf32>
    %52 = vector.extract_strided_slice %14 {offsets = [0, 16], sizes = [8, 8], strides = [1, 1]} : vector<8x32xf32> to vector<8x8xf32>
    %53 = vector.extract_strided_slice %11 {offsets = [0, 16], sizes = [8, 8], strides = [1, 1]} : vector<8x32xf32> to vector<8x8xf32>
    %54 = vector.extract_strided_slice %12 {offsets = [0, 16], sizes = [8, 8], strides = [1, 1]} : vector<8x32xf32> to vector<8x8xf32>
    %cst_30 = arith.constant dense<0.000000e+00> : vector<8x8xf32>
    %55 = tpu.matmul %52, %53, %cst_30 {dimension_numbers = #tpu.dot_dimension_numbers<[1], [1], [0], [0], [0, 0, 1, 0], [], []>} : vector<8x8xf32>, vector<8x8xf32>, vector<8x8xf32> -> vector<8x8xf32>
    %cst_31 = arith.constant dense<0xFF800000> : vector<8xf32>
    %56 = vector.multi_reduction <maximumf>, %55, %cst_31 [1] : vector<8x8xf32> to vector<8xf32>
    %57 = vector.shape_cast %56 : vector<8xf32> to vector<8x1xf32>
    %58 = vector.broadcast %57 : vector<8x1xf32> to vector<8x8xf32>
    %59 = arith.subf %55, %58 : vector<8x8xf32>
    %60 = math.exp %59 : vector<8x8xf32>
    %cst_32 = arith.constant dense<0.000000e+00> : vector<8xf32>
    %61 = vector.multi_reduction <add>, %60, %cst_32 [1] : vector<8x8xf32> to vector<8xf32>
    %62 = vector.shape_cast %61 : vector<8xf32> to vector<8x1xf32>
    %63 = tpu.reciprocal %62 {approx = true} : vector<8x1xf32> -> vector<8x1xf32>
    %64 = vector.broadcast %63 : vector<8x1xf32> to vector<8x8xf32>
    %65 = arith.mulf %60, %64 : vector<8x8xf32>
    %cst_33 = arith.constant dense<0.000000e+00> : vector<8x8xf32>
    %66 = tpu.matmul %65, %54, %cst_33 {dimension_numbers = #tpu.dot_dimension_numbers<[1], [0], [0], [1], [0, 0, 1, 1], [], []>} : vector<8x8xf32>, vector<8x8xf32>, vector<8x8xf32> -> vector<8x8xf32>
    %67 = vector.extract_strided_slice %9 {offsets = [16, 0], sizes = [8, 128], strides = [1, 1]} : vector<32x128xf32> to vector<8x128xf32>
    %cst_34 = arith.constant dense<0.000000e+00> : vector<8x128xf32>
    %68 = tpu.matmul %66, %67, %cst_34 {dimension_numbers = #tpu.dot_dimension_numbers<[1], [0], [0], [1], [0, 0, 1, 1], [], []>} : vector<8x8xf32>, vector<8x128xf32>, vector<8x128xf32> -> vector<8x128xf32>
    %69 = arith.addf %51, %68 : vector<8x128xf32>
    %70 = vector.extract_strided_slice %14 {offsets = [0, 24], sizes = [8, 8], strides = [1, 1]} : vector<8x32xf32> to vector<8x8xf32>
    %71 = vector.extract_strided_slice %11 {offsets = [0, 24], sizes = [8, 8], strides = [1, 1]} : vector<8x32xf32> to vector<8x8xf32>
    %72 = vector.extract_strided_slice %12 {offsets = [0, 24], sizes = [8, 8], strides = [1, 1]} : vector<8x32xf32> to vector<8x8xf32>
    %cst_35 = arith.constant dense<0.000000e+00> : vector<8x8xf32>
    %73 = tpu.matmul %70, %71, %cst_35 {dimension_numbers = #tpu.dot_dimension_numbers<[1], [1], [0], [0], [0, 0, 1, 0], [], []>} : vector<8x8xf32>, vector<8x8xf32>, vector<8x8xf32> -> vector<8x8xf32>
    %cst_36 = arith.constant dense<0xFF800000> : vector<8xf32>
    %74 = vector.multi_reduction <maximumf>, %73, %cst_36 [1] : vector<8x8xf32> to vector<8xf32>
    %75 = vector.shape_cast %74 : vector<8xf32> to vector<8x1xf32>
    %76 = vector.broadcast %75 : vector<8x1xf32> to vector<8x8xf32>
    %77 = arith.subf %73, %76 : vector<8x8xf32>
    %78 = math.exp %77 : vector<8x8xf32>
    %cst_37 = arith.constant dense<0.000000e+00> : vector<8xf32>
    %79 = vector.multi_reduction <add>, %78, %cst_37 [1] : vector<8x8xf32> to vector<8xf32>
    %80 = vector.shape_cast %79 : vector<8xf32> to vector<8x1xf32>
    %81 = tpu.reciprocal %80 {approx = true} : vector<8x1xf32> -> vector<8x1xf32>
    %82 = vector.broadcast %81 : vector<8x1xf32> to vector<8x8xf32>
    %83 = arith.mulf %78, %82 : vector<8x8xf32>
    %cst_38 = arith.constant dense<0.000000e+00> : vector<8x8xf32>
    %84 = tpu.matmul %83, %72, %cst_38 {dimension_numbers = #tpu.dot_dimension_numbers<[1], [0], [0], [1], [0, 0, 1, 1], [], []>} : vector<8x8xf32>, vector<8x8xf32>, vector<8x8xf32> -> vector<8x8xf32>
    %85 = vector.extract_strided_slice %9 {offsets = [24, 0], sizes = [8, 128], strides = [1, 1]} : vector<32x128xf32> to vector<8x128xf32>
    %cst_39 = arith.constant dense<0.000000e+00> : vector<8x128xf32>
    %86 = tpu.matmul %84, %85, %cst_39 {dimension_numbers = #tpu.dot_dimension_numbers<[1], [0], [0], [1], [0, 0, 1, 1], [], []>} : vector<8x8xf32>, vector<8x128xf32>, vector<8x128xf32> -> vector<8x128xf32>
    %87 = arith.addf %69, %86 : vector<8x128xf32>
    %c0_40 = arith.constant 0 : index
    %c0_41 = arith.constant 0 : index
    %c0_42 = arith.constant 0 : index
    %88 = vector.load %arg8[%c0_40, %c0_41, %c0_42] : memref<1x8x128xf32, #tpu.memory_space<vmem>>, vector<1x8x128xf32>
    %89 = vector.shape_cast %88 : vector<1x8x128xf32> to vector<8x128xf32>
    %90 = vector.shape_cast %87 : vector<8x128xf32> to vector<1x8x128xf32>
    tpu.vector_store %arg8[%c0_40, %c0_41, %c0_42], %90 {strides = array<i32>} : memref<1x8x128xf32, #tpu.memory_space<vmem>>, vector<1x8x128xf32>,
    return
  }
  func.func @transform_0(%arg0: i32) -> (i32, i32, i32) {
    %c0_i32 = arith.constant 0 : i32
    %c0_i32_0 = arith.constant 0 : i32
    %c0_i32_1 = arith.constant 0 : i32
    return %arg0, %c0_i32, %c0_i32_0 : i32, i32, i32
  }
  func.func @transform_1(%arg0: i32) -> (i32, i32, i32) {
    %c0_i32 = arith.constant 0 : i32
    %c0_i32_0 = arith.constant 0 : i32
    %c0_i32_1 = arith.constant 0 : i32
    return %arg0, %c0_i32, %c0_i32_0 : i32, i32, i32
  }
  func.func @transform_2(%arg0: i32) -> (i32, i32, i32) {
    %c0_i32 = arith.constant 0 : i32
    %c0_i32_0 = arith.constant 0 : i32
    %c0_i32_1 = arith.constant 0 : i32
    return %arg0, %c0_i32, %c0_i32_0 : i32, i32, i32
  }
  func.func @transform_3(%arg0: i32) -> (i32, i32) {
    %c0_i32 = arith.constant 0 : i32
    %c0_i32_0 = arith.constant 0 : i32
    %c0_i32_1 = arith.constant 0 : i32
    return %c0_i32, %c0_i32_0 : i32, i32
  }
  func.func @transform_4(%arg0: i32) -> (i32, i32) {
    %c0_i32 = arith.constant 0 : i32
    %c0_i32_0 = arith.constant 0 : i32
    %c0_i32_1 = arith.constant 0 : i32
    return %c0_i32, %c0_i32_0 : i32, i32
  }
  func.func @transform_5(%arg0: i32) -> (i32, i32) {
    %c0_i32 = arith.constant 0 : i32
    %c0_i32_0 = arith.constant 0 : i32
    %c0_i32_1 = arith.constant 0 : i32
    return %c0_i32, %c0_i32_0 : i32, i32
  }
  func.func @transform_6(%arg0: i32) -> (i32, i32) {
    %c0_i32 = arith.constant 0 : i32
    %c0_i32_0 = arith.constant 0 : i32
    %c0_i32_1 = arith.constant 0 : i32
    return %c0_i32, %c0_i32_0 : i32, i32
  }
  func.func @transform_7(%arg0: i32) -> (i32, i32, i32) {
    %c0_i32 = arith.constant 0 : i32
    %c0_i32_0 = arith.constant 0 : i32
    %c0_i32_1 = arith.constant 0 : i32
    return %arg0, %c0_i32, %c0_i32_0 : i32, i32, i32
  }
}

</mosaic_0001>

<bundles_post_ra>
// kernel: tpu_custom_call.1
= control target key start
LH: loop header
LB: loop body
LE: loop exit
PB: predicated region body
PF: predicated region fallthrough
CT: control target
= control target key end

     0   :  { %s2790_s0 = inlined_call_operand.hbm [shape: f32[2,8,32], index: 0, kind: input, shape index: {}]   ;;  %s2791_s1 = inlined_call_operand.hbm [shape: f32[2,8,32], index: 1, kind: input, shape index: {}]   ;;  %s2792_s2 = inlined_call_operand.hbm [shape: f32[2,8,32], index: 2, kind: input, shape index: {}]   ;;  %s2793_s3 = inlined_call_operand.hbm [shape: f32[32,32], index: 3, kind: input, shape index: {}]   ;;  %s2794_s4 = inlined_call_operand.hbm [shape: f32[32,32], index: 4, kind: input, shape index: {}]   ;;  %s2795_s5 = inlined_call_operand.hbm [shape: f32[32,32], index: 5, kind: input, shape index: {}]   ;;  %s2796_s6 = inlined_call_operand.hbm [shape: f32[32,128], index: 6, kind: input, shape index: {}]   ;;  %s2797_s7 = inlined_call_operand.hbm [shape: f32[2,8,128], index: 7, kind: output, shape index: {}]  }
   0x1   :  { %2815 = sst [smem:[#allocation23_spill]] %s2790_s0 }
   0x2   :  { %2816 = sst [smem:[#allocation24_spill]] %s2791_s1 }
   0x3   :  { %2817 = sst [smem:[#allocation25_spill]] %s2793_s3 }
   0x4   :  { %2818 = sst [smem:[#allocation26_spill]] %s2795_s5 }
   0x5   :  { %12 = vsyncpa [#allocation3], 0 }
   0x6   :  { %14 = vsyncpa [#allocation3 + $0x1], 0 }
   0x7   :  { %15 = vsyncpa [#allocation6], 0 }
   0x8   :  { %17 = vsyncpa [#allocation6 + $0x1], 0 }
   0x9   :  { %18 = vsyncpa [#allocation9], 0 }
   0xa   :  { %19 = vsyncpa [#allocation12], 0 }
   0xb   :  { %20 = vsyncpa [#allocation4], 0 }
   0xc   :  { %22 = vsyncpa [#allocation4 + $0x1], 0  ;;  %s2398_s24 = smov 0   ;;  %s2400_s25 = smov 0  }
   0xd   :  { %s2402_s26 = smov 0   ;;  %s2404_s27 = smov 0  }
   0xe LB: > { %2819 = sst [smem:[#allocation20_spill]] %s2341_s27  ;;  %s2343_s28 = smov [#allocation8]   ;;  %s2341_s27 = sphi %s2404_s27, %s2850_s27   ;;  %s2337_s26 = sphi %s2402_s26, %s2854_s26   ;;  %s2333_s25 = sphi %s2400_s25, %s2853_s25   ;;  %s2329_s24 = sphi %s2398_s24, %s2852_s24  }
   0xf   : > { %s233_s29 = sshll.u32 %s2343_s28, 4  ;;  %s2419_s30 = sadd.s32 4294967295, %s2341_s27   ;;  %s234_s29 = int_to_ptr.vmem [resolvable:$true] %s233_s29 }
  0x10   : > { %p1781_p0 = scmp.ge.s32.totalorder %s2341_s27, 1  ;;  %p2807_p1 = scmp.eq.s32.totalorder %s2419_s30, 0 }
  0x11   : > { %p221_p2 = scmp.lt.s32.totalorder %s2341_s27, 3  ;;  %s2344_s9 = smov [#allocation11]  }
  0x12   : > { %s259_s10 = sshll.u32 %s2344_s9, 4  ;;  %s2088_s12 = scalar_lea.vmem %s234_s29, 512  ;;  %s260_s10 = int_to_ptr.vmem [resolvable:$true] %s259_s10 }
  0x13   : > { %p2424_p3 = pnand %p1781_p0, %p221_p2  ;;  %p2089_p8 = scmp.ne.s32.totalorder %s234_s29, %s2088_s12 }
  0x14   : > { %p2096_p11 = scmp.lt.s32.totalorder %s234_s29, %s234_s29  ;;  %p2097_p12 = scmp.lt.s32.totalorder %s2088_s12, %s2088_s12 }
  0x15   : > { %s2820_s8 = scalar_select %p2424_p3, 1, 0 }
  0x16   : > { %p1981_p5 = pneg %p2424_p3  ;;  %p2098_p13 = por %p2097_p12, %p2096_p11 }
  0x18   : > { %p2433_p6 = pnand %p1981_p5, %p2807_p1 }
  0x1a   : > { %s2821_s11 = scalar_select %p2433_p6, 1, 0 }
  0x1b   : > { %p2798_p7 = pneg %p2433_p6 }
  0x1d   : > { %p2091_p9 = pnand %p2089_p8, %p2798_p7 }
  0x1f   : > { %p2092_p10 = pneg %p2091_p9 }
  0x21   : > { %p2099_p0 = pnand %p2098_p13, %p2092_p10 }
  0x23   : > { %2102 = shalt.err (!%p2099_p0)
}
  0x24   : > { %s2800_s13 = smov 128   ;;  %s2802_s14 = smov 8  }
  0x25   : > { %s2822_s3 = sld [smem:[#allocation25_spill]]  ;;  %s2114_s17 = scalar_lea.vmem %s260_s10, 512 }
  0x26   : > { %p2115_p2 = scmp.ne.s32.totalorder %s260_s10, %s2114_s17  ;;  %p2122_p9 = scmp.lt.s32.totalorder %s260_s10, %s260_s10 }
  0x27   : > { %p2123_p10 = scmp.lt.s32.totalorder %s2114_s17, %s2114_s17 }
  0x28   : > { %p2117_p5 = pnand %p2115_p2, %p2798_p7 }
  0x29   : > { %p2124_p11 = por %p2123_p10, %p2122_p9 }
  0x2a   : > { %p2118_p8 = pneg %p2117_p5 }
  0x2b   : > { %1984 = dma.hbm_to_vmem [thread:$0]  (!%p2433_p6), %s2822_s3, 512, %s234_s29, [#allocation9], %s2800_s13, %s2800_s13, %s2802_s14  }
  0x2c   : > { %p2125_p12 = pnand %p2124_p11, %p2118_p8 }
  0x2e   : > { %2128 = shalt.err (!%p2125_p12)
}
  0x2f   : > { %s2823_s5 = sld [smem:[#allocation26_spill]]  ;;  %s1780_s20 = sadd.s32 4294967294, %s2341_s27  }
  0x30   : > { %s2463_s21 = sadd.s32 1, %s2341_s27   ;;  %s35_s23 = sadd.s32 1, %s2337_s26 }
  0x31   : > { %2824 = sst [smem:[#allocation21_spill]] %s2463_s21  ;;  %s32_s22 = ssub.s32 %s2341_s27, %s2463_s21 }
  0x32   : > { %p33_p13 = scmp.eq.s32.totalorder %s32_s22, 0  ;;  %p42_p0 = scmp.ne.s32.totalorder %s2337_s26, %s2333_s25 }
  0x33   : > { %p43_p2 = scmp.eq.s32.totalorder %s2341_s27, 0  ;;  %p48_p5 = scmp.ne.s32.totalorder %s2333_s25, %s2329_s24 }
  0x34   : > { %s2474_s28 = scalar_select %p33_p13, %s2337_s26, %s35_s23  }
  0x35   : > { %1990 = dma.hbm_to_vmem [thread:$0]  (!%p2433_p6), %s2823_s5, 512, %s260_s10, [#allocation12], %s2800_s13, %s2800_s13, %s2802_s14  }
  0x36   : > { %2825 = sst [smem:[#allocation22_spill]] %s2474_s28  ;;  %p44_p8 = por %p43_p2, %p42_p0 }
  0x37   : > { %p2478_p9 = por %p2807_p1, %p48_p5  ;;  %p208_p10 = scmp.eq.s32.totalorder %s2419_s30, 1 }
  0x38   : > { %p214_p11 = scmp.eq.s32.totalorder %s1780_s20, 1  ;;  %p2012_p12 = scmp.lt.s32.totalorder %s2341_s27, 2 }
  0x39   : > { %s2826_s29 = scalar_select %p2478_p9, 1, 0 }
  0x3a   : > { %s2799_s9 = sand.u32 1, %s2337_s26   ;;  %p2485_p4 = por %p208_p10, %p42_p0 }
  0x3b   : > { %p2489_p7 = por %p214_p11, %p48_p5  ;;  %s2495_s15 = sshll.u32 %s2799_s9, 3 }
  0x3c   : > { %s2827_s10 = scalar_select %p2485_p4, 1, 0 }
  0x3d   : > { %s2828_s12 = scalar_select %p2489_p7, 1, 0 }
  0x3e   : > { %s2498_s16 = sshll.u32 %s2341_s27, 7  ;;  %p2500_p13 = pnand %p2012_p12, %p44_p8 }
  0x3f   : > { %s304_s18 = sand.u32 1, %s2341_s27   ;;  %s2830_s1 = sld [smem:[#allocation24_spill]] }
  0x40   : > { %s308_s23 = scalar_lea.vmem [#allocation5], %s2495_s15  ;;  %s2347_s13 = smov [#allocation10]  }
  0x41   : > { %s315_s9 = sshll.u32 %s308_s23, 4  ;;  %s246_s14 = sshll.u32 %s2347_s13, 4  ;;  %s2512_s9 = int_to_ptr.vmem [resolvable:$true] %s315_s9  ;;  %s247_s14 = int_to_ptr.vmem [resolvable:$true] %s246_s14 }
  0x42   : > { %s2514_s3 = scalar_lea.sflag [#allocation6], %s304_s18  ;;  %p2520_p2 = pneg %p2500_p13 }
  0x44   : > { %s2831_s28 = scalar_select %p2520_p2, 1, 0 }
  0x45   : > { %s2509_s22 = scalar_lea.hbm %s2830_s1, %s2498_s16  ;;  %s2134_s23 = scalar_lea.hbm %s2830_s1, 256 }
  0x46   : > { %s2129_s5 = scalar_lea.hbm %s2509_s22, 128  ;;  %p2135_p10 = scmp.lt.s32.totalorder %s2509_s22, %s2830_s1 }
  0x47   : > { %p2130_p0 = scmp.ne.s32.totalorder %s2509_s22, %s2129_s5  ;;  %p2136_p11 = scmp.lt.s32.totalorder %s2134_s23, %s2129_s5 }
  0x49   : > { %p2132_p5 = pnand %p2520_p2, %p2130_p0  ;;  %p2137_p12 = por %p2136_p11, %p2135_p10 }
  0x4b   : > { %p2133_p8 = pneg %p2132_p5 }
  0x4d   : > { %p2138_p1 = pnand %p2137_p12, %p2133_p8 }
  0x4f   : > { %2141 = shalt.err (!%p2138_p1)
}
  0x50   : > { %s2142_s13 = scalar_lea.vmem %s2512_s9, 128  ;;  %s2348_s18 = smov [#allocation5]  }
  0x51   : > { %p2143_p7 = scmp.ne.s32.totalorder %s2512_s9, %s2142_s13  ;;  %s2147_s19 = sshll.u32 %s2348_s18, 4  ;;  %s2148_s19 = int_to_ptr.vmem [resolvable:$false] %s2147_s19 }
  0x52   : > { %s2149_s20 = scalar_lea.vmem %s2148_s19, 256  ;;  %p2150_p4 = scmp.lt.s32.totalorder %s2512_s9, %s2148_s19 }
  0x53   : > { %p2145_p0 = pnand %p2143_p7, %p2520_p2  ;;  %p2151_p9 = scmp.lt.s32.totalorder %s2149_s20, %s2142_s13 }
  0x55   : > { %p2146_p5 = pneg %p2145_p0  ;;  %p2152_p3 = por %p2151_p9, %p2150_p4 }
  0x57   : > { %p2153_p6 = pnand %p2152_p3, %p2146_p5 }
  0x59   : > { %2156 = shalt.err (!%p2153_p6)
}
  0x5a   : > { %2000 = dma.hbm_to_vmem [thread:$0]  (!%p2500_p13), %s2509_s22, 128, %s2512_s9, %s2514_s3  }
  0x5b   : > { %s2168_s5 = scalar_lea.vmem %s247_s14, 512  ;;  %p2832_p7 = scmp.ne.s32.totalorder %s2821_s11, 0 }
  0x5c   : > { %p2169_p1 = scmp.ne.s32.totalorder %s247_s14, %s2168_s5  ;;  %p2176_p12 = scmp.lt.s32.totalorder %s247_s14, %s247_s14 }
  0x5d   : > { %p2833_p8 = pneg %p2832_p7  ;;  %p2177_p0 = scmp.lt.s32.totalorder %s2168_s5, %s2168_s5 }
  0x5f   : > { %p2171_p10 = pnand %p2169_p1, %p2833_p8  ;;  %p2178_p2 = por %p2177_p0, %p2176_p12 }
  0x61   : > { %p2172_p11 = pneg %p2171_p10 }
  0x63   : > { %p2179_p4 = pnand %p2178_p2, %p2172_p11 }
  0x65   : > { %2182 = shalt.err (!%p2179_p4)
}
  0x66   : > { %s2834_s27 = smov 8   ;;  %s2835_s21 = smov 128  }
  0x67   : > { %1987 = dma.hbm_to_vmem [thread:$0]  (!%p2832_p7), %s2794_s4, 512, %s247_s14, [#allocation9], %s2835_s21, %s2835_s21, %s2834_s27  }
  0x68   : > { %s2349_s9 = smov [#allocation13]   ;;  %p2836_p6 = pmov %p2833_p8 }
  0x69   : > { %s272_s22 = sshll.u32 %s2349_s9, 4  ;;  %s273_s22 = int_to_ptr.vmem [resolvable:$true] %s272_s22 }
  0x6a   : > { %s2194_s18 = scalar_lea.vmem %s273_s22, 512  ;;  %p2202_p5 = scmp.lt.s32.totalorder %s273_s22, %s273_s22 }
  0x6b   : > { %p2195_p3 = scmp.ne.s32.totalorder %s273_s22, %s2194_s18  ;;  %p2203_p1 = scmp.lt.s32.totalorder %s2194_s18, %s2194_s18 }
  0x6d   : > { %p2197_p9 = pnand %p2195_p3, %p2836_p6  ;;  %p2204_p8 = por %p2203_p1, %p2202_p5 }
  0x6f   : > { %p2198_p2 = pneg %p2197_p9 }
  0x71   : > { %p2205_p10 = pnand %p2204_p8, %p2198_p2 }
  0x73   : > { %2208 = shalt.err (!%p2205_p10)
}
  0x74   : > { %1993 = dma.hbm_to_vmem [thread:$0]  (!%p2832_p7), %s2796_s6, 512, %s273_s22, [#allocation12], %s2835_s21, %s2835_s21, %s2834_s27  }
  0x75   : > { %s2837_s0 = sld [smem:[#allocation23_spill]]  ;;  %s290_s11 = scalar_lea.vmem [#allocation2], %s2495_s15 }
  0x76   : > { %s297_s13 = sshll.u32 %s290_s11, 4  ;;  %s2838_s9 = sand.u32 1, %s2337_s26   ;;  %s298_s13 = int_to_ptr.vmem [resolvable:$true] %s297_s13 }
  0x77   : > { %s287_s18 = scalar_lea.sflag [#allocation3], %s2838_s9  ;;  %p2839_p12 = scmp.ne.s32.totalorder %s2831_s28, 0 }
  0x7b   : > { %s2569_s23 = scalar_lea.hbm %s2837_s0, %s2498_s16  ;;  %s2214_s21 = scalar_lea.hbm %s2837_s0, 256 }
  0x7c   : > { %s2209_s1 = scalar_lea.hbm %s2569_s23, 128  ;;  %p2215_p7 = scmp.lt.s32.totalorder %s2569_s23, %s2837_s0 }
  0x7d   : > { %p2210_p11 = scmp.ne.s32.totalorder %s2569_s23, %s2209_s1  ;;  %p2216_p3 = scmp.lt.s32.totalorder %s2214_s21, %s2209_s1 }
  0x7f   : > { %p2212_p0 = pnand %p2210_p11, %p2839_p12  ;;  %p2217_p6 = por %p2216_p3, %p2215_p7 }
  0x81   : > { %p2213_p4 = pneg %p2212_p0 }
  0x83   : > { %p2218_p9 = pnand %p2217_p6, %p2213_p4 }
  0x85   : > { %2221 = shalt.err (!%p2218_p9)
}
  0x86   : > { %s2222_s20 = scalar_lea.vmem %s298_s13, 128  ;;  %s2350_s5 = smov [#allocation2]  }
  0x87   : > { %p2223_p2 = scmp.ne.s32.totalorder %s298_s13, %s2222_s20  ;;  %s2227_s11 = sshll.u32 %s2350_s5, 4  ;;  %s2228_s11 = int_to_ptr.vmem [resolvable:$false] %s2227_s11 }
  0x88   : > { %s2229_s9 = scalar_lea.vmem %s2228_s11, 256  ;;  %p2230_p8 = scmp.lt.s32.totalorder %s298_s13, %s2228_s11 }
  0x89   : > { %p2225_p5 = pnand %p2223_p2, %p2839_p12  ;;  %p2231_p10 = scmp.lt.s32.totalorder %s2229_s9, %s2222_s20 }
  0x8b   : > { %p2226_p1 = pneg %p2225_p5  ;;  %p2232_p11 = por %p2231_p10, %p2230_p8 }
  0x8d   : > { %p2233_p0 = pnand %p2232_p11, %p2226_p1 }
  0x8f   : > { %2236 = shalt.err (!%p2233_p0)
}
  0x90   : > { %1997 = dma.hbm_to_vmem [thread:$0]  (!%p2500_p13), %s2569_s23, 128, %s298_s13, %s287_s18  }
  0x91   : > { %s331_s27 = scalar_lea.hbm %s2792_s2, %s2498_s16  ;;  %s326_s21 = scalar_lea.vmem [#allocation7], %s2495_s15 }
  0x92   : > { %s333_s22 = sshll.u32 %s326_s21, 4  ;;  %s2237_s19 = scalar_lea.hbm %s331_s27, 128  ;;  %s334_s22 = int_to_ptr.vmem [resolvable:$true] %s333_s22 }
  0x93   : > { %p2238_p4 = scmp.ne.s32.totalorder %s331_s27, %s2237_s19  ;;  %s2242_s11 = scalar_lea.hbm %s2792_s2, 256 }
  0x94   : > { %p2243_p6 = scmp.lt.s32.totalorder %s331_s27, %s2792_s2  ;;  %p2244_p9 = scmp.lt.s32.totalorder %s2242_s11, %s2237_s19 }
  0x95   : > { %p2240_p7 = pnand %p2238_p4, %p2839_p12 }
  0x96   : > { %p2245_p2 = por %p2244_p9, %p2243_p6 }
  0x97   : > { %p2241_p3 = pneg %p2240_p7 }
  0x99   : > { %p2246_p5 = pnand %p2245_p2, %p2241_p3 }
  0x9b   : > { %2249 = shalt.err (!%p2246_p5)
}
  0x9c   : > { %s2250_s15 = scalar_lea.vmem %s334_s22, 128  ;;  %s2351_s16 = smov [#allocation7]  }
  0x9d   : > { %p2251_p1 = scmp.ne.s32.totalorder %s334_s22, %s2250_s15  ;;  %s2255_s23 = sshll.u32 %s2351_s16, 4  ;;  %s2256_s23 = int_to_ptr.vmem [resolvable:$false] %s2255_s23 }
  0x9e   : > { %s2257_s13 = scalar_lea.vmem %s2256_s23, 256  ;;  %p2258_p11 = scmp.lt.s32.totalorder %s334_s22, %s2256_s23 }
  0x9f   : > { %p2253_p8 = pnand %p2251_p1, %p2839_p12  ;;  %p2259_p0 = scmp.lt.s32.totalorder %s2257_s13, %s2250_s15 }
  0xa1   : > { %p2254_p10 = pneg %p2253_p8  ;;  %p2260_p4 = por %p2259_p0, %p2258_p11 }
  0xa3   : > { %p2261_p7 = pnand %p2260_p4, %p2254_p10 }
  0xa5   : > { %2264 = shalt.err (!%p2261_p7)
}
  0xa6   : > { %2003 = dma.hbm_to_vmem [thread:$0]  (!%p2500_p13), %s331_s27, 128, %s334_s22, %s2514_s3  }
  0xa7   : > { %p2840_p3 = scmp.ne.s32.totalorder %s2820_s8, 0 }
  0xa8   : > { %s2611_s0 = sand.u32 (!%p2840_p3), 1, %s2333_s25   ;;  %p2841_p12 = scmp.ne.s32.totalorder (!%p2840_p3), %s2826_s29, 0 }
  0xa9   : > { %342 = sbr.rel (%p2840_p3) target bundleno = 2624 (0xa40), region = 48  ;;  %s2614_s28 = sshll.u32 (!%p2840_p3), %s2611_s0, 3 }
  0xaa   : > { %s345_s18 = scalar_lea.sflag (!%p2840_p3), [#allocation3], %s2611_s0  ;;  %s348_s1 = scalar_lea.vmem (!%p2840_p3), [#allocation2], %s2614_s28 }
  0xae   : > { %2308 = dma.done.wait (%p2841_p12), %s345_s18, 128  }
  0xaf   : > { %2310 = vsyncadd (%p2841_p12), %s345_s18, 4294967168  ;;  %s353_s3 = sand.u32 1, %s2419_s30   ;;  %s357_s17 = scalar_lea.vmem [#allocation5], %s2614_s28 }
  0xb0   : > { %s354_s8 = scalar_lea.sflag [#allocation6], %s353_s3 }
  0xb1   : > { %2312 = dma.done.wait (%p2841_p12), %s354_s8, 256  }
  0xb2   : > { %2314 = vsyncadd (%p2841_p12), %s354_s8, 4294967040  ;;  %s366_s14 = scalar_lea.vmem [#allocation7], %s2614_s28  ;;  %p2842_p13 = scmp.eq.s32.totalorder %s2419_s30, 0 }
  0xb4   : > { %2316 = dma.done.wait (%p2842_p13), [#allocation9], 1024   ;;  %p2843_p6 = pmov %p2842_p13 }
  0xb6   : > { %2318 = vsyncadd (%p2843_p6), [#allocation9], 4294966272  ;;  %p2844_p9 = pmov %p2843_p6 }
  0xb7   : > { %p2845_p2 = pmov %p2843_p6 }
  0xb8   : > { %2320 = dma.done.wait (%p2844_p9), [#allocation12], 1024  }
  0xb9   : > { %2322 = vsyncadd (%p2845_p2), [#allocation12], 4294966272  ;;  %v2352_v0 = vmov 0.0   ;;  %vm2353_vm0 = vmmov 0   ;;  %v429_v1 = vld [vmem:[#allocation8 + $0x18] sm:$0xff]  ;;  %v428_v3 = vld [vmem:[#allocation8 + $0x10] sm:$0xff] }
  0xba   : > { %1864 = vmatprep.subr.mxu0 %v2352_v0  ;;  %1875 = vmatprep.subr.mxu1 %v2352_v0  ;;  %v433_v2 = vld [vmem:[#allocation10 + $0x18] sm:$0xff]  ;;  %v432_v4 = vld [vmem:[#allocation10 + $0x10] sm:$0xff]  ;;  %v427_v5 = vld [vmem:[#allocation8 + $0x8] sm:$0xff]  ;;  %vm442_vm1 = vcmask 261120   ;;  %vm663_vm2 = vcmask 64512   ;;  %s2354_s29 = smov 120  }
  0xbb   : > { %1872 = vmatprep.mubr.msk.f32.mxu0 %vm2353_vm0, %v2352_v0  ;;  %1883 = vmatprep.mubr.msk.f32.mxu1 %vm2353_vm0, %v2352_v0  ;;  %v431_v6 = vld [vmem:[#allocation10 + $0x8] sm:$0xff]  ;;  %v426_v7 = vld [vmem:[#allocation8] sm:$0xff]  ;;  %v423_v9 = vld [vmem:[%s348_s1] sm:$0xff]  ;;  %s2355_s27 = smov 112   ;;  %s2356_s21 = smov 104  }
  0xbc   : > { %1865 = vmatpush3.msra.mxu0 %v429_v1  ;;  %1876 = vmatpush3.msra.mxu1 %v433_v2  ;;  %v430_v8 = vld [vmem:[#allocation10] sm:$0xff]  ;;  %v437_v11 = vld [vmem:[#allocation11 + $0x18] sm:$0xff]  ;;  %v436_v12 = vld [vmem:[#allocation11 + $0x10] sm:$0xff]  ;;  %s1822_s22 = sshll.u32 %s2419_s30, 7  ;;  %s422_s19 = scalar_lea.vmem [#allocation14], %s2614_s28 }
  0xbd   : > { %1866 = vmatprep.subr.mxu0 %v2352_v0  ;;  %1877 = vmatprep.subr.mxu1 %v2352_v0  ;;  %v424_v10 = vld [vmem:[%s357_s17] sm:$0xff]  ;;  %v425_v15 = vld [vmem:[%s366_s14] sm:$0xff]  ;;  %s1629_s20 = sshll.u32 %s422_s19, 4  ;;  %s2753_s9 = scalar_lea.hbm %s2797_s7, %s1822_s22  ;;  %s1630_s20 = int_to_ptr.vmem [resolvable:$true] %s1629_s20 }
  0xbe   : > { %1867 = vmatpush3.msra.mxu0 %v428_v3  ;;  %1878 = vmatpush3.msra.mxu1 %v432_v4  ;;  %v435_v13 = vld [vmem:[#allocation11 + $0x8] sm:$0xff]  ;;  %v434_v14 = vld [vmem:[#allocation11] sm:$0xff]  ;;  %s1616_s15 = scalar_lea.sflag [#allocation4], %s2611_s0  ;;  %s2265_s16 = scalar_lea.vmem %s1630_s20, 128 }
  0xbf   : > { %1868 = vmatprep.subr.mxu0 %v2352_v0  ;;  %1879 = vmatprep.subr.mxu1 %v2352_v0  ;;  %v439_v44 = vld [vmem:[#allocation13 + $0x8] sm:$0xff]  ;;  %v438_v49 = vld [vmem:[#allocation13] sm:$0xff]  ;;  %p2266_p5 = scmp.ne.s32.totalorder %s1630_s20, %s2265_s16  ;;  %p2846_p1 = scmp.ne.s32.totalorder %s2827_s10, 0 }
  0xc0   : > { %1869 = vmatpush3.msra.mxu0 %v427_v5  ;;  %1880 = vmatpush3.msra.mxu1 %v431_v6  ;;  %s2357_s23 = smov [#allocation14]  }
  0xc1   : > { %1870 = vmatprep.subr.mxu0 %v2352_v0  ;;  %1881 = vmatprep.subr.mxu1 %v2352_v0  ;;  %p2267_p8 = pnand %p2266_p5, %p2846_p1  ;;  %s2269_s30 = sshll.u32 %s2357_s23, 4  ;;  %s2270_s30 = int_to_ptr.vmem [resolvable:$false] %s2269_s30 }
  0xc2   : > { %1871 = vmatpush3.msra.mxu0 %v426_v7  ;;  %1882 = vmatpush3.msra.mxu1 %v430_v8  ;;  %s2271_s13 = scalar_lea.vmem %s2270_s30, 256  ;;  %p2272_p11 = scmp.lt.s32.totalorder %s1630_s20, %s2270_s30 }
  0xc3   : > { %1873 = vmatmul.mubr.msk.f32.vlgmr.msra.gmra.mxu0 %vm442_vm1, %v423_v9  ;;  %1884 = vmatmul.mubr.msk.f32.vlgmr.msra.gmra.mxu1 %vm442_vm1, %v424_v10  ;;  %p2268_p10 = pneg %p2267_p8  ;;  %p2273_p0 = scmp.lt.s32.totalorder %s2271_s13, %s2265_s16 }
  0xc4   : > { %1897 = vmatprep.subr.mxu1 %v2352_v0  ;;  %1899 = vmatprep.mubr.msk.f32.mxu1 %vm2353_vm0, %v2352_v0 }
  0xc5   : > { %1886 = vmatprep.subr.mxu0 %v2352_v0  ;;  %1894 = vmatprep.mubr.msk.f32.mxu0 %vm2353_vm0, %v2352_v0  ;;  %p2274_p4 = por %p2273_p0, %p2272_p11 }
  0xc6   : > { %1887 = vmatpush3.msra.mxu0 %v437_v11  ;;  %v440_v11 = vld [vmem:[#allocation13 + $0x10] sm:$0xff] }
  0xc7   : > { %1888 = vmatprep.subr.mxu0 %v2352_v0  ;;  %p2275_p7 = pnand %p2274_p4, %p2268_p10 }
  0xc8   : > { %1889 = vmatpush3.msra.mxu0 %v436_v12 }
  0xc9   : > { %1890 = vmatprep.subr.mxu0 %v2352_v0 }
  0xca   : > { %1891 = vmatpush3.msra.mxu0 %v435_v13 }
  0xcb   : > { %1892 = vmatprep.subr.mxu0 %v2352_v0 }
  0xcc   : > { %1893 = vmatpush3.msra.mxu0 %v434_v14 }
  0xcd   : > { %1895 = vmatmul.mubr.msk.f32.vlgmr.msra.gmra.mxu0 %vm442_vm1, %v425_v15  ;;  %1907 = vmatprep.subr.mxu0 %v2352_v0 }
  0xce   : > { %1909 = vmatprep.mubr.msk.f32.mxu0 %vm2353_vm0, %v2352_v0 }
 0x183   : > { %v512_v16 = vpop.f32.mrf.mxu0  ;;  %v2670_v17 = vpop.f32.mrf.mxu1 }
 0x184   : > { %v2672_v18 = vmul.f32 0.35355338, %v512_v16  ;;  %826 = vrot.lane.b32.xlu0 %v2670_v17, %s2354_s29  ;;  %1898 = vmatpush3.xpose.msk.msra.mxu1 %vm663_vm2, %v2670_v17 }
 0x185   : > { %v1874_v19 = vpop.f32.mrf.mxu0  ;;  %v1885_v20 = vpop.f32.mrf.mxu1  ;;  %1902 = vmatprep.subr.mxu1 %v2352_v0 }
 0x187   : > { %1900 = vmatmul.mubr.msk.f32.vlgmr.msra.gmra.mxu1 %vm663_vm2, %v2672_v18 }
 0x188   : > { %824 = vrot.lane.b32.xlu0 %v2672_v18, %s2354_s29  ;;  %1904 = vmatprep.mubr.msk.f32.mxu1 %vm2353_vm0, %v2352_v0 }
 0x18d   : > { %v2685_v21 = vpop.f32.mrf.mxu0 }
 0x18e   : > { %1903 = vmatpush3.msra.mxu1 %v2685_v21 }
 0x18f   : > { %v1896_v22 = vpop.f32.mrf.mxu0  ;;  %1912 = vmatprep.subr.mxu1 %v2352_v0 }
 0x1f6   : > { %v827_v23 = vpop.permute.xlu0 %826 }
 0x1f7   : > { %1908 = vmatpush3.xpose.msk.msra.mxu0 %vm663_vm2, %v827_v23  ;;  %v441_v23 = vld [vmem:[#allocation13 + $0x18] sm:$0xff] }
 0x1f8   : > { %1917 = vmatprep.subr.mxu0 %v2352_v0 }
 0x1fa   : > { %v825_v24 = vpop.permute.xlu0 %824 }
 0x1fb   : > { %1910 = vmatmul.mubr.msk.f32.vlgmr.msra.gmra.mxu0 %vm663_vm2, %v825_v24 }
 0x1fc   : > { %1919 = vmatprep.mubr.msk.f32.mxu0 %vm2353_vm0, %v2352_v0  ;;  %1918 = vmatpush3.msra.mxu0 %v439_v44 }
 0x1fd   : > { %1927 = vmatprep.subr.mxu0 %v2352_v0 }
 0x247   : > { %v736_v25 = vpop.f32.mrf.mxu1 }
 0x248   : > { %v740_v26 = vsel %vm663_vm2, %v736_v25, -inf }
 0x249   : > { %741 = vmax.xlane.f32.xlu1 %v740_v26  ;;  %v1901_v27 = vpop.f32.mrf.mxu1 }
 0x2bb   : > { %v898_v28 = vpop.f32.mrf.mxu0 }
 0x2bc   : > { %v902_v29 = vsel %vm663_vm2, %v898_v28, -inf }
 0x2bd   : > { %903 = vmax.xlane.f32.xlu1 %v902_v29  ;;  %v1911_v30 = vpop.f32.mrf.mxu0 }
 0x2d2   : > { %v742_v31 = vpop.xlane.xlu1 %741 }
 0x2d3   : > { %v743_v32 = vsub.f32 %v736_v25, %v742_v31 }
 0x2d5   : > { %v744_v33 = vmul.f32 1.442695, %v743_v32 }
 0x2d7   : > { %2061 = vpow2.f32 %v744_v33 }
 0x2e4   : > { %v2062_v34 = vpop.eup %2061 }
 0x2e5   : > { %v746_v35 = vsel %vm663_vm2, %v2062_v34, 0.0 }
 0x2e6   : > { %747 = vadd.xlane.f32.xlu0 %v746_v35 }
 0x2fc   : > { %1225 = vrot.lane.b32.xlu0 %v2685_v21, %s2355_s27 }
 0x346   : > { %v904_v36 = vpop.xlane.xlu1 %903 }
 0x347   : > { %v905_v37 = vsub.f32 %v898_v28, %v904_v36 }
 0x349   : > { %v906_v38 = vmul.f32 1.442695, %v905_v37 }
 0x34b   : > { %2063 = vpow2.f32 %v906_v38 }
 0x358   : > { %v2064_v39 = vpop.eup %2063 }
 0x359   : > { %v908_v40 = vsel %vm663_vm2, %v2064_v39, 0.0 }
 0x35a   : > { %909 = vadd.xlane.f32.xlu1 %v908_v40 }
 0x36b   : > { %914 = vrot.lane.b32.xlu1 %v2685_v21, %s2354_s29 }
 0x36f   : > { %v748_v41 = vpop.xlane.xlu0 %747  ;;  %1138 = vrot.lane.b32.xlu1 %v2670_v17, %s2355_s27 }
 0x370   : > { %2065 = vrcp.f32 %v748_v41 }
 0x373   : > { %1136 = vrot.lane.b32.xlu1 %v2672_v18, %s2355_s27  ;;  %v1226_v51 = vpop.permute.xlu0 %1225 }
 0x37d   : > { %v2066_v42 = vpop.eup %2065 }
 0x37e   : > { %v750_v43 = vmul.f32 %v2066_v42, %v2062_v34 }
 0x380   : > { %1905 = vmatmul.mubr.msk.f32.vlgmr.msra.gmra.mxu1 %vm663_vm2, %v750_v43 }
 0x381   : > { %1914 = vmatprep.mubr.msk.f32.mxu1 %vm2353_vm0, %v2352_v0 }
 0x3e3   : > { %v910_v45 = vpop.xlane.xlu1 %909 }
 0x3e4   : > { %2067 = vrcp.f32 %v910_v45 }
 0x3e7   : > { %v915_v46 = vpop.permute.xlu1 %914 }
 0x3e8   : > { %1913 = vmatpush3.msra.mxu1 %v915_v46 }
 0x3e9   : > { %1922 = vmatprep.subr.mxu1 %v2352_v0 }
 0x3eb   : > { %v1139_v53 = vpop.permute.xlu1 %1138 }
 0x3ef   : > { %v1137_v56 = vpop.permute.xlu1 %1136 }
 0x3f1   : > { %v2068_v47 = vpop.eup %2067 }
 0x3f2   : > { %v912_v48 = vmul.f32 %v2068_v47, %v2064_v39 }
 0x3f4   : > { %1915 = vmatmul.mubr.msk.f32.vlgmr.msra.gmra.mxu1 %vm663_vm2, %v912_v48 }
 0x3f5   : > { %1923 = vmatpush3.msra.mxu1 %v438_v49  ;;  %1924 = vmatprep.mubr.msk.f32.mxu1 %vm2353_vm0, %v2352_v0 }
 0x3f6   : > { %1932 = vmatprep.subr.mxu1 %v2352_v0 }
 0x440   : > { %v820_v50 = vpop.f32.mrf.mxu1 }
 0x441   : > { %1925 = vmatmul.mubr.msk.f32.vlgmr.msra.gmra.mxu1 %vm663_vm2, %v820_v50 }
 0x442   : > { %1933 = vmatpush3.msra.mxu1 %v1226_v51  ;;  %v1906_v52 = vpop.f32.mrf.mxu1  ;;  %1934 = vmatprep.mubr.msk.f32.mxu1 %vm2353_vm0, %v2352_v0 }
 0x443   : > { %1942 = vmatprep.subr.mxu1 %v2352_v0 }
 0x4b4   : > { %v986_v54 = vpop.f32.mrf.mxu1 }
 0x4b5   : > { %1920 = vmatmul.mubr.msk.f32.vlgmr.msra.gmra.mxu0 %vm663_vm2, %v986_v54 }
 0x4b6   : > { %1928 = vmatpush3.xpose.msk.msra.mxu0 %vm663_vm2, %v1139_v53  ;;  %v1916_v55 = vpop.f32.mrf.mxu1  ;;  %1929 = vmatprep.mubr.msk.f32.mxu0 %vm2353_vm0, %v2352_v0 }
 0x4b7   : > { %1937 = vmatprep.subr.mxu0 %v2352_v0 }
 0x4b9   : > { %1930 = vmatmul.mubr.msk.f32.vlgmr.msra.gmra.mxu0 %vm663_vm2, %v1137_v56 }
 0x4ba   : > { %1939 = vmatprep.mubr.msk.f32.mxu0 %vm2353_vm0, %v2352_v0  ;;  %1938 = vmatpush3.msra.mxu0 %v440_v11 }
 0x4bb   : > { %1947 = vmatprep.subr.mxu0 %v2352_v0 }
 0x501   : > { %v1132_v57 = vpop.f32.mrf.mxu1 }
 0x503   : > { %v1926_v58 = vpop.f32.mrf.mxu1 }
 0x575   : > { %v1059_v59 = vpop.f32.mrf.mxu0 }
 0x577   : > { %v1921_v60 = vpop.f32.mrf.mxu0 }
 0x579   : > { %v1210_v61 = vpop.f32.mrf.mxu0 }
 0x57a   : > { %v1214_v62 = vsel %vm663_vm2, %v1210_v61, -inf }
 0x57b   : > { %1215 = vmax.xlane.f32.xlu1 %v1214_v62  ;;  %v1931_v63 = vpop.f32.mrf.mxu0 }
 0x604   : > { %v1216_v1 = vpop.xlane.xlu1 %1215 }
 0x605   : > { %v1217_v2 = vsub.f32 %v1210_v61, %v1216_v1 }
 0x607   : > { %v1218_v3 = vmul.f32 1.442695, %v1217_v2 }
 0x609   : > { %2069 = vpow2.f32 %v1218_v3 }
 0x616   : > { %v2070_v4 = vpop.eup %2069 }
 0x617   : > { %v1220_v5 = vsel %vm663_vm2, %v2070_v4, 0.0 }
 0x618   : > { %1221 = vadd.xlane.f32.xlu0 %v1220_v5 }
 0x62e   : > { %1377 = vrot.lane.b32.xlu0 %v2670_v17, %s2356_s21 }
 0x632   : > { %1375 = vrot.lane.b32.xlu0 %v2672_v18, %s2356_s21 }
 0x6a1   : > { %v1222_v6 = vpop.xlane.xlu0 %1221 }
 0x6a2   : > { %2071 = vrcp.f32 %v1222_v6 }
 0x6a5   : > { %v1378_v8 = vpop.permute.xlu0 %1377 }
 0x6a9   : > { %v1376_v10 = vpop.permute.xlu0 %1375 }
 0x6af   : > { %v2072_v7 = vpop.eup %2071 }
 0x6b0   : > { %v1224_v9 = vmul.f32 %v2072_v7, %v2070_v4 }
 0x6b2   : > { %1935 = vmatmul.mubr.msk.f32.vlgmr.msra.gmra.mxu1 %vm663_vm2, %v1224_v9 }
 0x6b3   : > { %1943 = vmatpush3.xpose.msk.msra.mxu1 %vm663_vm2, %v1378_v8  ;;  %1944 = vmatprep.mubr.msk.f32.mxu1 %vm2353_vm0, %v2352_v0 }
 0x6b4   : > { %1952 = vmatprep.subr.mxu1 %v2352_v0 }
 0x6b6   : > { %1945 = vmatmul.mubr.msk.f32.vlgmr.msra.gmra.mxu1 %vm663_vm2, %v1376_v10 }
 0x6b7   : > { %1954 = vmatprep.mubr.msk.f32.mxu1 %vm2353_vm0, %v2352_v0  ;;  %1953 = vmatpush3.msra.mxu1 %v441_v23 }
 0x772   : > { %v1297_v12 = vpop.f32.mrf.mxu1 }
 0x773   : > { %1940 = vmatmul.mubr.msk.f32.vlgmr.msra.gmra.mxu0 %vm663_vm2, %v1297_v12 }
 0x774   : > { %v1936_v13 = vpop.f32.mrf.mxu1  ;;  %1949 = vmatprep.mubr.msk.f32.mxu0 %vm2353_vm0, %v2352_v0  ;;  %v1133_v0 = vadd.f32 %v1132_v57, %v1059_v59 }
 0x776   : > { %v1449_v14 = vpop.f32.mrf.mxu1 }
 0x777   : > { %v1453_v15 = vsel %vm663_vm2, %v1449_v14, -inf }
 0x778   : > { %1454 = vmax.xlane.f32.xlu0 %v1453_v15  ;;  %v1946_v16 = vpop.f32.mrf.mxu1 }
 0x801   : > { %v1455_v17 = vpop.xlane.xlu0 %1454 }
 0x802   : > { %v1456_v18 = vsub.f32 %v1449_v14, %v1455_v17 }
 0x804   : > { %v1457_v19 = vmul.f32 1.442695, %v1456_v18 }
 0x806   : > { %2073 = vpow2.f32 %v1457_v19 }
 0x813   : > { %v2074_v20 = vpop.eup %2073 }
 0x814   : > { %v1459_v22 = vsel %vm663_vm2, %v2074_v20, 0.0 }
 0x815   : > { %1460 = vadd.xlane.f32.xlu1 %v1459_v22 }
 0x826   : > { %1464 = vrot.lane.b32.xlu1 %v2685_v21, %s2356_s21 }
 0x833   : > { %v1370_v24 = vpop.f32.mrf.mxu0 }
 0x834   : > { %v1374_v25 = vadd.f32 %v1370_v24, %v1133_v0 }
 0x835   : > { %v1941_v26 = vpop.f32.mrf.mxu0 }
 0x89e   : > { %v1461_v27 = vpop.xlane.xlu1 %1460 }
 0x89f   : > { %2075 = vrcp.f32 %v1461_v27 }
 0x8a2   : > { %v1465_v28 = vpop.permute.xlu1 %1464 }
 0x8a3   : > { %1948 = vmatpush3.msra.mxu0 %v1465_v28 }
 0x8ac   : > { %v2076_v29 = vpop.eup %2075 }
 0x8ad   : > { %v1463_v30 = vmul.f32 %v2076_v29, %v2074_v20 }
 0x8af   : > { %1950 = vmatmul.mubr.msk.f32.vlgmr.msra.gmra.mxu0 %vm663_vm2, %v1463_v30 }
 0x96f   : > { %v1536_v31 = vpop.f32.mrf.mxu0 }
 0x970   : > { %1955 = vmatmul.mubr.msk.f32.vlgmr.msra.gmra.mxu1 %vm663_vm2, %v1536_v31 }
 0x971   : > { %v1951_v21 = vpop.f32.mrf.mxu0 }
 0xa30   : > { %v1609_v32 = vpop.f32.mrf.mxu1 }
 0xa31   : > { %v1613_v33 = vadd.f32 %v1609_v32, %v1374_v25 }
 0xa32   : > { %v1956_v34 = vpop.f32.mrf.mxu1 }
 0xa33   : > { %1614 = vst [vmem:[%s422_s19] sm:$0xff] %v1613_v33 }
 0xa34   : > { %2278 = shalt.err (!%p2275_p7)
}
 0xa35   : > { %s2279_s28 = scalar_lea.hbm %s2753_s9, 128  ;;  %s2283_s1 = scalar_lea.hbm %s2797_s7, 256 }
 0xa36   : > { %p2280_p3 = scmp.ne.s32.totalorder %s2753_s9, %s2279_s28  ;;  %p2284_p6 = scmp.lt.s32.totalorder %s2753_s9, %s2797_s7 }
 0xa37   : > { %p2285_p9 = scmp.lt.s32.totalorder %s2283_s1, %s2279_s28 }
 0xa38   : > { %p2281_p12 = pnand %p2280_p3, %p2846_p1 }
 0xa39   : > { %p2286_p2 = por %p2285_p9, %p2284_p6 }
 0xa3a   : > { %p2282_p13 = pneg %p2281_p12 }
 0xa3c   : > { %p2287_p5 = pnand %p2286_p2, %p2282_p13 }
 0xa3e   : > { %2290 = shalt.err (!%p2287_p5)
}
 0xa3f   : > { %1979 = dma.vmem_to_hbm [thread:$0]  (%p2846_p1), %s1630_s20, 128, %s2753_s9, %s1616_s15  }
 0xa40 PF: > { %s2847_s17 = sld [smem:[#allocation20_spill]]  ;;  %s1641_s14 = sand.u32 1, %s2329_s24  }
 0xa41   : > { %p2848_p8 = scmp.ne.s32.totalorder %s2828_s12, 0  ;;  %s1642_s29 = scalar_lea.sflag [#allocation4], %s1641_s14 }
 0xa46   : > { %p2849_p10 = scmp.ge.s32.totalorder %s2847_s17, 2 }
 0xa48   : > { %p2005_p11 = pnand %p2849_p10, %p2848_p8 }
 0xa4a   : > { %p2006_p0 = pneg %p2005_p11 }
 0xa4c   : > { %2324 = dma.done.wait (%p2006_p0), %s1642_s29, 128  }
 0xa4d   : > { %2326 = vsyncadd (%p2006_p0), %s1642_s29, 4294967168  ;;  %s2850_s27 = sld [smem:[#allocation21_spill]]  ;;  %s2852_s24 = smov %s2333_s25 }
 0xa4e   : > { %s2851_s21 = sld [smem:[#allocation22_spill]]  ;;  %s2853_s25 = smov %s2337_s26 }
 0xa53   : > { %p25_p4 = scmp.ge.s32.totalorder %s2850_s27, 4  }
 0xa54   : > { %s2854_s26 = smov %s2851_s21 }
 0xa55   :  { %27 = sbr.rel (!%p25_p4) target bundleno = 14 (0xe), region = 133 }
 0xa5a   :  { %1647 = vsyncpa [#allocation3], 1 }
 0xa5b   :  { %1649 = vsyncpa [#allocation3 + $0x1], 1 }
 0xa5c   :  { %1650 = vsyncpa [#allocation6], 1 }
 0xa5d   :  { %1652 = vsyncpa [#allocation6 + $0x1], 1 }
 0xa5e   :  { %1653 = vsyncpa [#allocation9], 1 }
 0xa5f   :  { %1654 = vsyncpa [#allocation12], 1 }
 0xa60   :  { %1655 = vsyncpa [#allocation4], 1 }
 0xa61   :  { %1657 = vsyncpa [#allocation4 + $0x1], 1 }

</bundles_post_ra>
